<compile_context>
chip_gen: v6e
topology: v6e:2x2x1
jax: 0.10.0
libtpu: 0.0.40
codegen_flags: <defaults>
</compile_context>

<pallas_src>
import jax
import jax.numpy as jnp
from jax.experimental import pallas as pl
from jax.experimental.pallas import tpu as pltpu

_LANE = 128
_SUBLANE = 8


def _h_swish_kernel(x_ref, o_ref):
    # Elementwise in the input dtype (f32 exact; bf16 stays bf16 -> half the
    # vreg/VMEM traffic on v6e/v7x). relu6 clamp is exact in either dtype.
    x = x_ref[...]
    three = jnp.asarray(3.0, dtype=x.dtype)
    six = jnp.asarray(6.0, dtype=x.dtype)
    o_ref[...] = (x * (jnp.clip(x + three, 0, six) / six)).astype(o_ref.dtype)


def _choose_width(n_elem: int):
    """Widest lane-dense (multiple-of-128) last dim dividing n_elem.

    Prefers a width that still leaves >= 8 rows; returns None if 128 does not
    divide n_elem (caller falls back to a padding path).
    """
    best = None
    for w in (32 * _LANE, 16 * _LANE, 8 * _LANE, 4 * _LANE, 2 * _LANE, _LANE):
        if n_elem % w == 0:
            if best is None:
                best = w
            if n_elem // w >= _SUBLANE:
                return w
    return best


def h_swish(x: jax.Array) -> jax.Array:
    """Hard-swish, elementwise. Accepts any shape (used with NCHW input)."""
    orig_shape = x.shape
    orig_dtype = x.dtype
    n_elem = x.size
    if n_elem == 0:
        return x

    itemsize = jnp.dtype(orig_dtype).itemsize

    width = _choose_width(n_elem)
    if width is None:
        # Ragged element count: pad the flat array to a multiple of 128.
        # Safe because h_swish(0) == 0; only hit for unusual shapes.
        width = _LANE
        rows = pl.cdiv(n_elem, width)
        pad = rows * width - n_elem
        flat = jnp.concatenate([x.reshape(-1), jnp.zeros((pad,), dtype=orig_dtype)])
        padded = True
    else:
        rows = n_elem // width
        flat = x.reshape(-1)
        padded = False

    x2d = flat.reshape(rows, width)

    # Per-generation block budget: ~4 MiB blocks, but never more than 1/16 of
    # physical VMEM so 2(in)+2(out) double buffers stay well within limits
    # (v5e/v6e: 128 MiB, v7x: 64 MiB).
    try:
        info = pltpu.get_tpu_info()
        vmem_cap = int(getattr(info, "vmem_capacity_bytes", 64 * 1024 * 1024))
    except Exception:
        vmem_cap = 64 * 1024 * 1024
    block_bytes = min(4 * 1024 * 1024, vmem_cap // 16)

    row_bytes = width * itemsize
    tm = max(_SUBLANE, (block_bytes // row_bytes) // _SUBLANE * _SUBLANE)
    if tm >= rows:
        tm = rows
    # Keep >= 2 grid steps on larger inputs so the parallel axis can be split
    # across the 2 TensorCores per chip on v7x.
    if tm == rows and rows >= 2 * _SUBLANE:
        tm = (((rows + 1) // 2) + _SUBLANE - 1) // _SUBLANE * _SUBLANE

    grid = (pl.cdiv(rows, tm),)

    out2d = pl.pallas_call(
        _h_swish_kernel,
        out_shape=jax.ShapeDtypeStruct((rows, width), orig_dtype),
        grid_spec=pltpu.PrefetchScalarGridSpec(
            num_scalar_prefetch=0,
            grid=grid,
            in_specs=[pl.BlockSpec((tm, width), lambda i: (i, 0))],
            out_specs=pl.BlockSpec((tm, width), lambda i: (i, 0)),
        ),
        compiler_params=pltpu.CompilerParams(
            dimension_semantics=("parallel",),
            vmem_limit_bytes=32 * 1024 * 1024,
        ),
    )(x2d)

    out = out2d.reshape(-1)
    if padded:
        out = out[:n_elem]
    return out.reshape(orig_shape)


def h_swish_ref(x):
    return x * (jnp.clip(x + 3.0, 0.0, 6.0) / 6.0)


if __name__ == "__main__":
    key = jax.random.PRNGKey(0)
    # NCHW, matching the PyTorch convention for this backbone module.
    x = jax.random.normal(key, (2, 4, 16, 16), dtype=jnp.float32) * 4.0

    out = jax.block_until_ready(h_swish(x))

    ref = h_swish_ref(x)
    assert out.shape == x.shape and out.dtype == x.dtype
    assert jnp.allclose(out, ref, atol=1e-6, rtol=1e-6)
    print("KERNEL_OK")
</pallas_src>

<mosaic_0001>
module attributes {stable_mosaic.version = 11 : i64} {
  func.func @_h_swish_kernel(%arg0: i32, %arg1: memref<8x256xf32, #tpu.memory_space<vmem>>, %arg2: memref<8x256xf32, #tpu.memory_space<vmem>>) attributes {dimension_semantics = [#tpu.dimension_semantics<parallel>], iteration_bounds = array<i64: 1>, scalar_prefetch = 0 : i64, scratch_operands = 0 : i64, tpu.core_type = #tpu.core_type<tc>, window_params = [{transform_indices = @transform_0, window_bounds = array<i64: 8, 256>}, {transform_indices = @transform_1, window_bounds = array<i64: 8, 256>}]} {
    %c0 = arith.constant 0 : index
    %c0_0 = arith.constant 0 : index
    %0 = vector.load %arg1[%c0, %c0_0] : memref<8x256xf32, #tpu.memory_space<vmem>>, vector<8x256xf32>
    %cst = arith.constant 3.000000e+00 : f32
    %1 = vector.broadcast %cst : f32 to vector<8x256xf32>
    %2 = arith.addf %0, %1 : vector<8x256xf32>
    %c0_i32 = arith.constant 0 : i32
    %cst_1 = arith.constant 6.000000e+00 : f32
    %3 = arith.sitofp %c0_i32 : i32 to f32
    %4 = vector.broadcast %3 : f32 to vector<8x256xf32>
    %5 = arith.maximumf %4, %2 : vector<8x256xf32>
    %6 = vector.broadcast %cst_1 : f32 to vector<8x256xf32>
    %7 = arith.minimumf %6, %5 : vector<8x256xf32>
    %cst_2 = arith.constant 6.000000e+00 : f32
    %8 = vector.broadcast %cst_2 : f32 to vector<8x256xf32>
    %9 = arith.divf %7, %8 : vector<8x256xf32>
    %10 = arith.mulf %0, %9 : vector<8x256xf32>
    %c0_3 = arith.constant 0 : index
    %c0_4 = arith.constant 0 : index
    %11 = vector.load %arg2[%c0_3, %c0_4] : memref<8x256xf32, #tpu.memory_space<vmem>>, vector<8x256xf32>
    tpu.vector_store %arg2[%c0_3, %c0_4], %10 {strides = array<i32>} : memref<8x256xf32, #tpu.memory_space<vmem>>, vector<8x256xf32>,
    return
  }
  func.func @transform_0(%arg0: i32) -> (i32, i32) {
    %c0_i32 = arith.constant 0 : i32
    %c0_i32_0 = arith.constant 0 : i32
    return %arg0, %c0_i32 : i32, i32
  }
  func.func @transform_1(%arg0: i32) -> (i32, i32) {
    %c0_i32 = arith.constant 0 : i32
    %c0_i32_0 = arith.constant 0 : i32
    return %arg0, %c0_i32 : i32, i32
  }
}

</mosaic_0001>

<bundles_post_ra>
// kernel: tpu_custom_call.1
= control target key start
LH: loop header
LB: loop body
LE: loop exit
PB: predicated region body
PF: predicated region fallthrough
CT: control target
= control target key end

     0   :  { %6 = vsyncpa [#allocation3], 0  ;;  %s115_s0 = inlined_call_operand.hbm [shape: f32[8,256], index: 0, kind: input, shape index: {}]   ;;  %s116_s1 = inlined_call_operand.hbm [shape: f32[8,256], index: 1, kind: output, shape index: {}]  }
   0x1   :  { %7 = vsyncpa [#allocation4], 0  ;;  %s97_s6 = smov [#allocation2]  }
   0x2   :  { %s14_s7 = sshll.u32 %s97_s6, 4  ;;  %s15_s7 = int_to_ptr.vmem [resolvable:$true] %s14_s7 }
   0x3   :  { %s61_s8 = scalar_lea.vmem %s15_s7, 256  ;;  %p66_p1 = scmp.lt.s32.totalorder %s15_s7, %s15_s7 }
   0x4   :  { %p62_p0 = scmp.ne.s32.totalorder %s15_s7, %s61_s8  ;;  %p67_p2 = scmp.lt.s32.totalorder %s61_s8, %s61_s8 }
   0x6   :  { %p68_p3 = por %p67_p2, %p66_p1 }
   0x8   :  { %p69_p4 = pnand %p68_p3, %p62_p0 }
   0xa   :  { %72 = shalt.err (!%p69_p4)
}
   0xb   :  { %17 = dma.hbm_to_vmem [thread:$0]  %s115_s0, 256, %s15_s7, [#allocation3]  }
   0xc   :  { %93 = dma.done.wait [#allocation3], 256  }
   0xd   :  { %94 = vsyncadd [#allocation3], 4294967040  ;;  %v21_v0 = vld [vmem:[#allocation2] sm:$0xff]  ;;  %v22_v1 = vld [vmem:[#allocation2 + $0x8] sm:$0xff]  ;;  %s98_s11 = smov [#allocation5]  }
   0xe   :  { %v23_v2 = vadd.f32 3.0, %v21_v0  ;;  %v24_v3 = vadd.f32 3.0, %v22_v1  ;;  %s42_s12 = sshll.u32 %s98_s11, 4  ;;  %s43_s12 = int_to_ptr.vmem [resolvable:$true] %s42_s12 }
   0xf   :  { %s73_s0 = scalar_lea.vmem %s43_s12, 256  ;;  %p78_p6 = scmp.lt.s32.totalorder %s43_s12, %s43_s12 }
  0x10   :  { %v25_v4 = vmax.f32 %v23_v2, 0.0  ;;  %v26_v5 = vmax.f32 %v24_v3, 0.0  ;;  %p74_p5 = scmp.ne.s32.totalorder %s43_s12, %s73_s0  ;;  %p79_p7 = scmp.lt.s32.totalorder %s73_s0, %s73_s0 }
  0x12   :  { %v27_v6 = vmin.f32 %v25_v4, 6.0  ;;  %v28_v7 = vmin.f32 %v26_v5, 6.0  ;;  %p80_p8 = por %p79_p7, %p78_p6 }
  0x14   :  { %v30_v8 = vmul.f32 0.16666667, %v27_v6  ;;  %v31_v9 = vmul.f32 0.16666667, %v28_v7  ;;  %p81_p9 = pnand %p80_p8, %p74_p5 }
  0x16   :  { %v32_v10 = vmul.f32 %v30_v8, %v21_v0  ;;  %v33_v11 = vmul.f32 %v31_v9, %v22_v1 }
  0x18   :  { %34 = vst [vmem:[#allocation5] sm:$0xff] %v32_v10  ;;  %35 = vst [vmem:[#allocation5 + $0x8] sm:$0xff] %v33_v11 }
  0x19   :  { %84 = shalt.err (!%p81_p9)
}
  0x1a   :  { %45 = dma.vmem_to_hbm [thread:$0]  %s43_s12, 256, %s116_s1, [#allocation4]  }
  0x1b   :  { %95 = dma.done.wait [#allocation4], 256  }
  0x1c   :  { %96 = vsyncadd [#allocation4], 4294967040 }
  0x1d   :  { %49 = vsyncpa [#allocation3], 1 }
  0x1e   :  { %50 = vsyncpa [#allocation4], 1 }

</bundles_post_ra>
